<compile_context>
chip_gen: v7x
topology: tpu7x:2x2x1
jax: 0.10.0
libtpu: 0.0.40
codegen_flags: <defaults>
</compile_context>

<pallas_src>
import functools

import jax
import jax.numpy as jnp
from jax import lax
from jax.experimental import pallas as pl
from jax.experimental.pallas import tpu as pltpu


def _cast(x, dt):
    return x if x.dtype == dt else x.astype(dt)


def residual_block_kernel(x_ref, w1_ref, t1_ref, w2_ref, t2_ref, masks_ref, out_ref,
                          *, img_w, act_dtype, mxu_dtype):
    # x_ref    : (Cp, block_n*H*W)  channel-padded images, block_n images fused on lanes
    # w*_ref   : (Cp, 9*Cp)         folded conv+BN weights (already mxu_dtype), cols (ky,kx,cin)
    # t*_ref   : (Cp, 1)            folded conv-bias + BN shift (per output channel), f32
    # masks_ref: (8, block_n*H*W)   combined per-tap border masks ("same" zero padding)
    # out_ref  : (Cp, block_n*H*W)  channel-padded output (trimmed to C in the wrapper)
    cp, bl = x_ref.shape
    masks = masks_ref[...]                                   # (8, BL), act_dtype

    def im2col(img):
        # (Cp, BL) -> (9*Cp, BL). Row (ky*3 + kx)*Cp + ci holds channel ci shifted by the
        # tap offset (ky-1, kx-1); out-of-image positions (incl. cross-image wrap from the
        # lane-fused sub-batch) are zeroed by the precomputed border masks.
        parts = []
        mi = 0
        for ky in range(3):
            for kx in range(3):
                dy, dx = ky - 1, kx - 1
                if dy == 0 and dx == 0:
                    parts.append(img)
                    continue
                off = dy * img_w + dx
                tap = pltpu.roll(img, shift=(-off) % bl, axis=1)
                tap = tap * masks[mi:mi + 1, :]              # broadcast over sublanes
                mi += 1
                parts.append(tap)
        return jnp.concatenate(parts, axis=0)                # tile-aligned: Cp multiple of 8

    x32 = x_ref[...]                                         # (Cp, BL) f32 (kept for residual)
    w1 = w1_ref[...]
    w2 = w2_ref[...]
    t1 = t1_ref[...]
    t2 = t2_ref[...]

    # conv1 + bn1 + relu  (single K = 9*Cp MXU dot, f32 accumulation)
    c1 = _cast(im2col(_cast(x32, act_dtype)), mxu_dtype)
    h1 = jnp.dot(w1, c1, preferred_element_type=jnp.float32) + t1
    h1 = jnp.maximum(h1, 0.0)

    # conv2 + bn2
    c2 = _cast(im2col(_cast(h1, act_dtype)), mxu_dtype)
    h2 = jnp.dot(w2, c2, preferred_element_type=jnp.float32) + t2

    # residual add (proj is None since in_dim == out_dim) + relu; full lane-dense store
    out_ref[...] = jnp.maximum(x32 + h2, 0.0).astype(out_ref.dtype)


def residual_block(x_nchw, w1, b1, s1, t1, w2, b2, s2, t2,
                   *, block_n=None, mxu_dtype=jnp.float32, early_cast=True):
    """x_nchw: (N, C, H, W) f32. w*: (3,3,Cin,Cout) HWIO. b*, s*, t*: (1, Cout).

    s/t are the eval-mode BatchNorm scale/shift. Returns (N, Cout, H, W).
    On v6e/v7x with non-trivial channel counts pass mxu_dtype=jnp.bfloat16 (early_cast=True);
    on v5e keep early_cast=False so the roll/mask path stays f32 (no bf16 VPU there).
    """
    N, C, H, W = x_nchw.shape
    kh, kw, cin, cout = w1.shape
    assert (kh, kw) == (3, 3) and cin == C
    # Residual add without projection requires in_dim == out_dim (ResidualBlock.proj is None).
    assert cout == C, "projection path (in_dim != out_dim) not implemented"
    # roll + border-mask "same" padding is only valid for 3x3 / stride 1 and H, W >= 2
    assert H >= 2 and W >= 2
    HW = H * W
    Cp = ((C + 7) // 8) * 8                      # pad channels to a sublane multiple
    act_dtype = mxu_dtype if (early_cast and mxu_dtype != jnp.float32) else jnp.float32

    # ---- host-side constant folding:  (conv(x, w) + b) * s + t == conv(x, w*s) + (b*s + t)
    def pack_w(w, s):
        we = w * s.reshape(1, 1, 1, C)                                  # scale per out-chan
        wp = jnp.zeros((3, 3, Cp, Cp), we.dtype).at[:, :, :C, :C].set(we)
        # (kH,kW,Cin,Cout) -> (Cout,kH,kW,Cin) -> (Cp, 9*Cp); column (ky*3+kx)*Cp + ci
        return jnp.transpose(wp, (3, 0, 1, 2)).reshape(Cp, 9 * Cp).astype(mxu_dtype)

    def pack_t(b, s, t):
        te = (b * s + t).reshape(C)
        return jnp.zeros((Cp, 1), jnp.float32).at[:C, 0].set(te)

    w1m, t1v = pack_w(w1, s1), pack_t(b1, s1, t1)
    w2m, t2v = pack_w(w2, s2), pack_t(b2, s2, t2)

    # ---- batch blocking: guarantee >= 2 grid steps so the software pipeline is active
    #      (and the "parallel" batch axis can shard across TCs on v7x).
    if block_n is None:
        cands = [b for b in range(min(N, 8), 0, -1) if N % b == 0 and N // b >= 2]
        block_n = cands[0] if cands else N
    assert N % block_n == 0
    grid_n = N // block_n
    BL = block_n * HW                            # lanes per grid step (multiple of 128 via HW)

    # ---- 8 combined per-tap border masks ("same" padding + cross-image wrap kill),
    #      tiled block_n times along the fused lane axis. Host constants.
    yy, xx = jnp.meshgrid(jnp.arange(H), jnp.arange(W), indexing="ij")
    yy = yy.reshape(HW)
    xx = xx.reshape(HW)
    rows = []
    for ky in range(3):
        for kx in range(3):
            dy, dx = ky - 1, kx - 1
            if dy == 0 and dx == 0:
                continue
            m = jnp.ones((HW,), jnp.float32)
            if dy == -1:
                m = m * (yy >= 1)
            if dy == 1:
                m = m * (yy <= H - 2)
            if dx == -1:
                m = m * (xx >= 1)
            if dx == 1:
                m = m * (xx <= W - 2)
            rows.append(m)
    masks = jnp.tile(jnp.stack(rows, axis=0), (1, block_n)).astype(act_dtype)   # (8, BL)

    # ---- input layout: (N,C,H,W) -> (C, N, HW) -> channel-pad -> (Cp, N*HW)
    #      (one host-side transpose; spatial stays lane-contiguous per image)
    xp = jnp.transpose(x_nchw.reshape(N, C, HW), (1, 0, 2)).reshape(C, N * HW)
    if Cp != C:
        xp = jnp.pad(xp, ((0, Cp - C), (0, 0)))

    kernel = functools.partial(residual_block_kernel,
                               img_w=W, act_dtype=act_dtype, mxu_dtype=mxu_dtype)
    out = pl.pallas_call(
        kernel,
        out_shape=jax.ShapeDtypeStruct((Cp, N * HW), x_nchw.dtype),
        grid_spec=pltpu.PrefetchScalarGridSpec(
            num_scalar_prefetch=0,
            grid=(grid_n,),
            in_specs=[
                pl.BlockSpec((Cp, BL), lambda n: (0, n)),
                pl.BlockSpec((Cp, 9 * Cp), lambda n: (0, 0)),
                pl.BlockSpec((Cp, 1), lambda n: (0, 0)),
                pl.BlockSpec((Cp, 9 * Cp), lambda n: (0, 0)),
                pl.BlockSpec((Cp, 1), lambda n: (0, 0)),
                pl.BlockSpec((8, BL), lambda n: (0, 0)),
            ],
            out_specs=pl.BlockSpec((Cp, BL), lambda n: (0, n)),
        ),
        compiler_params=pltpu.CompilerParams(
            # batch steps are independent -> shardable across TensorCores on v7x
            dimension_semantics=("parallel",)),
    )(xp, w1m, t1v, w2m, t2v, masks)

    # channel trim (cheap XLA slice on HBM) + layout back to NCHW
    out = out[:C].reshape(C, N, H, W)
    return jnp.transpose(out, (1, 0, 2, 3))


def _reference(x_nchw, w1, b1, s1, t1, w2, b2, s2, t2):
    """Pure-JAX reference (lax.conv) for a correctness sanity check."""
    x = jnp.transpose(x_nchw, (0, 2, 3, 1))  # NHWC
    dn = lax.conv_dimension_numbers(x.shape, w1.shape, ("NHWC", "HWIO", "NHWC"))
    h1 = lax.conv_general_dilated(x, w1, (1, 1), "SAME", dimension_numbers=dn)
    h1 = jnp.maximum((h1 + b1) * s1 + t1, 0.0)
    h2 = lax.conv_general_dilated(h1, w2, (1, 1), "SAME", dimension_numbers=dn)
    h2 = (h2 + b2) * s2 + t2
    out = jnp.maximum(x + h2, 0.0)
    return jnp.transpose(out, (0, 3, 1, 2))


if __name__ == "__main__":
    # Small shapes consistent with the module: batch=2, in_dim=out_dim=4, 16x16 spatial.
    N, C, H, W = 2, 4, 16, 16
    key = jax.random.PRNGKey(0)
    ks = jax.random.split(key, 9)

    x = jax.random.normal(ks[0], (N, C, H, W), jnp.float32)

    # Conv params (HWIO weights, biases).
    w1 = 0.1 * jax.random.normal(ks[1], (3, 3, C, C), jnp.float32)
    b1 = 0.1 * jax.random.normal(ks[2], (1, C), jnp.float32)
    w2 = 0.1 * jax.random.normal(ks[3], (3, 3, C, C), jnp.float32)
    b2 = 0.1 * jax.random.normal(ks[4], (1, C), jnp.float32)

    # BatchNorm params (eval mode, PyTorch-default running stats).
    eps = 1e-5
    gamma1 = 1.0 + 0.1 * jax.random.normal(ks[5], (1, C), jnp.float32)
    beta1 = 0.1 * jax.random.normal(ks[6], (1, C), jnp.float32)
    gamma2 = 1.0 + 0.1 * jax.random.normal(ks[7], (1, C), jnp.float32)
    beta2 = 0.1 * jax.random.normal(ks[8], (1, C), jnp.float32)
    run_mean = jnp.zeros((1, C), jnp.float32)
    run_var = jnp.ones((1, C), jnp.float32)

    s1 = gamma1 / jnp.sqrt(run_var + eps)
    t1 = beta1 - run_mean * s1
    s2 = gamma2 / jnp.sqrt(run_var + eps)
    t2 = beta2 - run_mean * s2

    # NOTE: default mxu_dtype=f32 keeps the tight tolerance below; with bf16 use ~1e-2.
    out = residual_block(x, w1, b1, s1, t1, w2, b2, s2, t2)
    out = jax.block_until_ready(out)

    ref = _reference(x, w1, b1, s1, t1, w2, b2, s2, t2)
    assert out.shape == (N, C, H, W)
    assert jnp.allclose(out, ref, atol=2e-4, rtol=2e-4), "mismatch vs JAX reference"

    print("KERNEL_OK")
</pallas_src>

<mosaic_0001>
module attributes {stable_mosaic.version = 11 : i64} {
  func.func @residual_block_kernel(%arg0: i32, %arg1: memref<8x256xf32, #tpu.memory_space<vmem>>, %arg2: memref<8x72xf32, #tpu.memory_space<vmem>>, %arg3: memref<8x1xf32, #tpu.memory_space<vmem>>, %arg4: memref<8x72xf32, #tpu.memory_space<vmem>>, %arg5: memref<8x1xf32, #tpu.memory_space<vmem>>, %arg6: memref<8x256xf32, #tpu.memory_space<vmem>>, %arg7: memref<8x256xf32, #tpu.memory_space<vmem>>) attributes {dimension_semantics = [#tpu.dimension_semantics<parallel>], iteration_bounds = array<i64: 2>, scalar_prefetch = 0 : i64, scratch_operands = 0 : i64, tpu.core_type = #tpu.core_type<tc>, window_params = [{transform_indices = @transform_0, window_bounds = array<i64: 8, 256>}, {pipeline_mode = #tpu.pipeline_mode<synchronous>, transform_indices = @transform_1, window_bounds = array<i64: 8, 72>}, {pipeline_mode = #tpu.pipeline_mode<synchronous>, transform_indices = @transform_2, window_bounds = array<i64: 8, 1>}, {pipeline_mode = #tpu.pipeline_mode<synchronous>, transform_indices = @transform_3, window_bounds = array<i64: 8, 72>}, {pipeline_mode = #tpu.pipeline_mode<synchronous>, transform_indices = @transform_4, window_bounds = array<i64: 8, 1>}, {pipeline_mode = #tpu.pipeline_mode<synchronous>, transform_indices = @transform_5, window_bounds = array<i64: 8, 256>}, {transform_indices = @transform_6, window_bounds = array<i64: 8, 256>}]} {
    %c0 = arith.constant 0 : index
    %c0_0 = arith.constant 0 : index
    %0 = vector.load %arg6[%c0, %c0_0] : memref<8x256xf32, #tpu.memory_space<vmem>>, vector<8x256xf32>
    %c0_1 = arith.constant 0 : index
    %c0_2 = arith.constant 0 : index
    %1 = vector.load %arg1[%c0_1, %c0_2] : memref<8x256xf32, #tpu.memory_space<vmem>>, vector<8x256xf32>
    %c0_3 = arith.constant 0 : index
    %c0_4 = arith.constant 0 : index
    %2 = vector.load %arg2[%c0_3, %c0_4] : memref<8x72xf32, #tpu.memory_space<vmem>>, vector<8x72xf32>
    %c0_5 = arith.constant 0 : index
    %c0_6 = arith.constant 0 : index
    %3 = vector.load %arg4[%c0_5, %c0_6] : memref<8x72xf32, #tpu.memory_space<vmem>>, vector<8x72xf32>
    %c0_7 = arith.constant 0 : index
    %c0_8 = arith.constant 0 : index
    %4 = vector.load %arg3[%c0_7, %c0_8] : memref<8x1xf32, #tpu.memory_space<vmem>>, vector<8x1xf32>
    %c0_9 = arith.constant 0 : index
    %c0_10 = arith.constant 0 : index
    %5 = vector.load %arg5[%c0_9, %c0_10] : memref<8x1xf32, #tpu.memory_space<vmem>>, vector<8x1xf32>
    %c17_i32 = arith.constant 17 : i32
    %6 = tpu.dynamic_rotate %1 by %c17_i32 dim 1 : vector<8x256xf32>, i32 -> vector<8x256xf32>
    %7 = vector.extract_strided_slice %0 {offsets = [0, 0], sizes = [1, 256], strides = [1, 1]} : vector<8x256xf32> to vector<1x256xf32>
    %8 = vector.broadcast %7 : vector<1x256xf32> to vector<8x256xf32>
    %9 = arith.mulf %6, %8 : vector<8x256xf32>
    %c16_i32 = arith.constant 16 : i32
    %10 = tpu.dynamic_rotate %1 by %c16_i32 dim 1 : vector<8x256xf32>, i32 -> vector<8x256xf32>
    %11 = vector.extract_strided_slice %0 {offsets = [1, 0], sizes = [1, 256], strides = [1, 1]} : vector<8x256xf32> to vector<1x256xf32>
    %12 = vector.broadcast %11 : vector<1x256xf32> to vector<8x256xf32>
    %13 = arith.mulf %10, %12 : vector<8x256xf32>
    %c15_i32 = arith.constant 15 : i32
    %14 = tpu.dynamic_rotate %1 by %c15_i32 dim 1 : vector<8x256xf32>, i32 -> vector<8x256xf32>
    %15 = vector.extract_strided_slice %0 {offsets = [2, 0], sizes = [1, 256], strides = [1, 1]} : vector<8x256xf32> to vector<1x256xf32>
    %16 = vector.broadcast %15 : vector<1x256xf32> to vector<8x256xf32>
    %17 = arith.mulf %14, %16 : vector<8x256xf32>
    %c1_i32 = arith.constant 1 : i32
    %18 = tpu.dynamic_rotate %1 by %c1_i32 dim 1 : vector<8x256xf32>, i32 -> vector<8x256xf32>
    %19 = vector.extract_strided_slice %0 {offsets = [3, 0], sizes = [1, 256], strides = [1, 1]} : vector<8x256xf32> to vector<1x256xf32>
    %20 = vector.broadcast %19 : vector<1x256xf32> to vector<8x256xf32>
    %21 = arith.mulf %18, %20 : vector<8x256xf32>
    %c255_i32 = arith.constant 255 : i32
    %22 = tpu.dynamic_rotate %1 by %c255_i32 dim 1 : vector<8x256xf32>, i32 -> vector<8x256xf32>
    %23 = vector.extract_strided_slice %0 {offsets = [4, 0], sizes = [1, 256], strides = [1, 1]} : vector<8x256xf32> to vector<1x256xf32>
    %24 = vector.broadcast %23 : vector<1x256xf32> to vector<8x256xf32>
    %25 = arith.mulf %22, %24 : vector<8x256xf32>
    %c241_i32 = arith.constant 241 : i32
    %26 = tpu.dynamic_rotate %1 by %c241_i32 dim 1 : vector<8x256xf32>, i32 -> vector<8x256xf32>
    %27 = vector.extract_strided_slice %0 {offsets = [5, 0], sizes = [1, 256], strides = [1, 1]} : vector<8x256xf32> to vector<1x256xf32>
    %28 = vector.broadcast %27 : vector<1x256xf32> to vector<8x256xf32>
    %29 = arith.mulf %26, %28 : vector<8x256xf32>
    %c240_i32 = arith.constant 240 : i32
    %30 = tpu.dynamic_rotate %1 by %c240_i32 dim 1 : vector<8x256xf32>, i32 -> vector<8x256xf32>
    %31 = vector.extract_strided_slice %0 {offsets = [6, 0], sizes = [1, 256], strides = [1, 1]} : vector<8x256xf32> to vector<1x256xf32>
    %32 = vector.broadcast %31 : vector<1x256xf32> to vector<8x256xf32>
    %33 = arith.mulf %30, %32 : vector<8x256xf32>
    %c239_i32 = arith.constant 239 : i32
    %34 = tpu.dynamic_rotate %1 by %c239_i32 dim 1 : vector<8x256xf32>, i32 -> vector<8x256xf32>
    %35 = vector.extract_strided_slice %0 {offsets = [7, 0], sizes = [1, 256], strides = [1, 1]} : vector<8x256xf32> to vector<1x256xf32>
    %36 = vector.broadcast %35 : vector<1x256xf32> to vector<8x256xf32>
    %37 = arith.mulf %34, %36 : vector<8x256xf32>
    %38 = tpu.concatenate %9, %13, %17, %21, %1, %25, %29, %33, %37 in 0 : vector<8x256xf32>, vector<8x256xf32>, vector<8x256xf32>, vector<8x256xf32>, vector<8x256xf32>, vector<8x256xf32>, vector<8x256xf32>, vector<8x256xf32>, vector<8x256xf32> -> vector<72x256xf32>
    %cst = arith.constant dense<0.000000e+00> : vector<8x256xf32>
    %39 = tpu.matmul %2, %38, %cst {dimension_numbers = #tpu.dot_dimension_numbers<[1], [0], [0], [1], [0, 0, 1, 1], [], []>} : vector<8x72xf32>, vector<72x256xf32>, vector<8x256xf32> -> vector<8x256xf32>
    %40 = vector.broadcast %4 : vector<8x1xf32> to vector<8x256xf32>
    %41 = arith.addf %39, %40 : vector<8x256xf32>
    %cst_11 = arith.constant 0.000000e+00 : f32
    %42 = vector.broadcast %cst_11 : f32 to vector<8x256xf32>
    %43 = arith.maximumf %41, %42 : vector<8x256xf32>
    %c17_i32_12 = arith.constant 17 : i32
    %44 = tpu.dynamic_rotate %43 by %c17_i32_12 dim 1 : vector<8x256xf32>, i32 -> vector<8x256xf32>
    %45 = vector.extract_strided_slice %0 {offsets = [0, 0], sizes = [1, 256], strides = [1, 1]} : vector<8x256xf32> to vector<1x256xf32>
    %46 = vector.broadcast %45 : vector<1x256xf32> to vector<8x256xf32>
    %47 = arith.mulf %44, %46 : vector<8x256xf32>
    %c16_i32_13 = arith.constant 16 : i32
    %48 = tpu.dynamic_rotate %43 by %c16_i32_13 dim 1 : vector<8x256xf32>, i32 -> vector<8x256xf32>
    %49 = vector.extract_strided_slice %0 {offsets = [1, 0], sizes = [1, 256], strides = [1, 1]} : vector<8x256xf32> to vector<1x256xf32>
    %50 = vector.broadcast %49 : vector<1x256xf32> to vector<8x256xf32>
    %51 = arith.mulf %48, %50 : vector<8x256xf32>
    %c15_i32_14 = arith.constant 15 : i32
    %52 = tpu.dynamic_rotate %43 by %c15_i32_14 dim 1 : vector<8x256xf32>, i32 -> vector<8x256xf32>
    %53 = vector.extract_strided_slice %0 {offsets = [2, 0], sizes = [1, 256], strides = [1, 1]} : vector<8x256xf32> to vector<1x256xf32>
    %54 = vector.broadcast %53 : vector<1x256xf32> to vector<8x256xf32>
    %55 = arith.mulf %52, %54 : vector<8x256xf32>
    %c1_i32_15 = arith.constant 1 : i32
    %56 = tpu.dynamic_rotate %43 by %c1_i32_15 dim 1 : vector<8x256xf32>, i32 -> vector<8x256xf32>
    %57 = vector.extract_strided_slice %0 {offsets = [3, 0], sizes = [1, 256], strides = [1, 1]} : vector<8x256xf32> to vector<1x256xf32>
    %58 = vector.broadcast %57 : vector<1x256xf32> to vector<8x256xf32>
    %59 = arith.mulf %56, %58 : vector<8x256xf32>
    %c255_i32_16 = arith.constant 255 : i32
    %60 = tpu.dynamic_rotate %43 by %c255_i32_16 dim 1 : vector<8x256xf32>, i32 -> vector<8x256xf32>
    %61 = vector.extract_strided_slice %0 {offsets = [4, 0], sizes = [1, 256], strides = [1, 1]} : vector<8x256xf32> to vector<1x256xf32>
    %62 = vector.broadcast %61 : vector<1x256xf32> to vector<8x256xf32>
    %63 = arith.mulf %60, %62 : vector<8x256xf32>
    %c241_i32_17 = arith.constant 241 : i32
    %64 = tpu.dynamic_rotate %43 by %c241_i32_17 dim 1 : vector<8x256xf32>, i32 -> vector<8x256xf32>
    %65 = vector.extract_strided_slice %0 {offsets = [5, 0], sizes = [1, 256], strides = [1, 1]} : vector<8x256xf32> to vector<1x256xf32>
    %66 = vector.broadcast %65 : vector<1x256xf32> to vector<8x256xf32>
    %67 = arith.mulf %64, %66 : vector<8x256xf32>
    %c240_i32_18 = arith.constant 240 : i32
    %68 = tpu.dynamic_rotate %43 by %c240_i32_18 dim 1 : vector<8x256xf32>, i32 -> vector<8x256xf32>
    %69 = vector.extract_strided_slice %0 {offsets = [6, 0], sizes = [1, 256], strides = [1, 1]} : vector<8x256xf32> to vector<1x256xf32>
    %70 = vector.broadcast %69 : vector<1x256xf32> to vector<8x256xf32>
    %71 = arith.mulf %68, %70 : vector<8x256xf32>
    %c239_i32_19 = arith.constant 239 : i32
    %72 = tpu.dynamic_rotate %43 by %c239_i32_19 dim 1 : vector<8x256xf32>, i32 -> vector<8x256xf32>
    %73 = vector.extract_strided_slice %0 {offsets = [7, 0], sizes = [1, 256], strides = [1, 1]} : vector<8x256xf32> to vector<1x256xf32>
    %74 = vector.broadcast %73 : vector<1x256xf32> to vector<8x256xf32>
    %75 = arith.mulf %72, %74 : vector<8x256xf32>
    %76 = tpu.concatenate %47, %51, %55, %59, %43, %63, %67, %71, %75 in 0 : vector<8x256xf32>, vector<8x256xf32>, vector<8x256xf32>, vector<8x256xf32>, vector<8x256xf32>, vector<8x256xf32>, vector<8x256xf32>, vector<8x256xf32>, vector<8x256xf32> -> vector<72x256xf32>
    %cst_20 = arith.constant dense<0.000000e+00> : vector<8x256xf32>
    %77 = tpu.matmul %3, %76, %cst_20 {dimension_numbers = #tpu.dot_dimension_numbers<[1], [0], [0], [1], [0, 0, 1, 1], [], []>} : vector<8x72xf32>, vector<72x256xf32>, vector<8x256xf32> -> vector<8x256xf32>
    %78 = vector.broadcast %5 : vector<8x1xf32> to vector<8x256xf32>
    %79 = arith.addf %77, %78 : vector<8x256xf32>
    %80 = arith.addf %1, %79 : vector<8x256xf32>
    %cst_21 = arith.constant 0.000000e+00 : f32
    %81 = vector.broadcast %cst_21 : f32 to vector<8x256xf32>
    %82 = arith.maximumf %80, %81 : vector<8x256xf32>
    %c0_22 = arith.constant 0 : index
    %c0_23 = arith.constant 0 : index
    %83 = vector.load %arg7[%c0_22, %c0_23] : memref<8x256xf32, #tpu.memory_space<vmem>>, vector<8x256xf32>
    tpu.vector_store %arg7[%c0_22, %c0_23], %82 {strides = array<i32>} : memref<8x256xf32, #tpu.memory_space<vmem>>, vector<8x256xf32>,
    return
  }
  func.func @transform_0(%arg0: i32) -> (i32, i32) {
    %c0_i32 = arith.constant 0 : i32
    %c0_i32_0 = arith.constant 0 : i32
    return %c0_i32, %arg0 : i32, i32
  }
  func.func @transform_1(%arg0: i32) -> (i32, i32) {
    %c0_i32 = arith.constant 0 : i32
    %c0_i32_0 = arith.constant 0 : i32
    %c0_i32_1 = arith.constant 0 : i32
    return %c0_i32, %c0_i32_0 : i32, i32
  }
  func.func @transform_2(%arg0: i32) -> (i32, i32) {
    %c0_i32 = arith.constant 0 : i32
    %c0_i32_0 = arith.constant 0 : i32
    %c0_i32_1 = arith.constant 0 : i32
    return %c0_i32, %c0_i32_0 : i32, i32
  }
  func.func @transform_3(%arg0: i32) -> (i32, i32) {
    %c0_i32 = arith.constant 0 : i32
    %c0_i32_0 = arith.constant 0 : i32
    %c0_i32_1 = arith.constant 0 : i32
    return %c0_i32, %c0_i32_0 : i32, i32
  }
  func.func @transform_4(%arg0: i32) -> (i32, i32) {
    %c0_i32 = arith.constant 0 : i32
    %c0_i32_0 = arith.constant 0 : i32
    %c0_i32_1 = arith.constant 0 : i32
    return %c0_i32, %c0_i32_0 : i32, i32
  }
  func.func @transform_5(%arg0: i32) -> (i32, i32) {
    %c0_i32 = arith.constant 0 : i32
    %c0_i32_0 = arith.constant 0 : i32
    %c0_i32_1 = arith.constant 0 : i32
    return %c0_i32, %c0_i32_0 : i32, i32
  }
  func.func @transform_6(%arg0: i32) -> (i32, i32) {
    %c0_i32 = arith.constant 0 : i32
    %c0_i32_0 = arith.constant 0 : i32
    return %c0_i32, %arg0 : i32, i32
  }
}

</mosaic_0001>

<bundles_post_ra>
// kernel: tpu_custom_call.1
= control target key start
LH: loop header
LB: loop body
LE: loop exit
PB: predicated region body
PF: predicated region fallthrough
CT: control target
= control target key end

     0   :  { %11 = vsyncpa [#allocation3], 0  ;;  %s1404_s0 = inlined_call_operand.hbm [shape: f32[8,512], index: 0, kind: input, shape index: {}]   ;;  %s1405_s1 = inlined_call_operand.vmem [shape: f32[8,72], index: 1, kind: input, shape index: {}]   ;;  %s1406_s2 = inlined_call_operand.vmem [shape: f32[8,1], index: 2, kind: input, shape index: {}]   ;;  %s1407_s3 = inlined_call_operand.vmem [shape: f32[8,72], index: 3, kind: input, shape index: {}]   ;;  %s1408_s4 = inlined_call_operand.vmem [shape: f32[8,1], index: 4, kind: input, shape index: {}]   ;;  %s1409_s5 = inlined_call_operand.vmem [shape: f32[8,256], index: 5, kind: input, shape index: {}]   ;;  %s1410_s6 = inlined_call_operand.hbm [shape: f32[8,512], index: 6, kind: output, shape index: {}]  }
   0x1   :  { %13 = vsyncpa [#allocation3 + $0x1], 0 }
   0x2   :  { %14 = vsyncpa [#allocation4], 0 }
   0x3   :  { %16 = vsyncpa [#allocation4 + $0x1], 0  ;;  %s984_s21 = smov 0   ;;  %s986_s22 = smov 0  }
   0x4   :  { %s988_s23 = smov 0   ;;  %s990_s24 = smov 0  }
   0x5 LB: > { %s1005_s25 = sadd.s32 4294967295, %s935_s24   ;;  %s732_s26 = sadd.s32 4294967294, %s935_s24   ;;  %s935_s24 = sphi %s990_s24, %s1427_s24   ;;  %s931_s23 = sphi %s988_s23, %s1426_s23   ;;  %s927_s22 = sphi %s986_s22, %s1425_s22   ;;  %s923_s21 = sphi %s984_s21, %s1424_s21  }
   0x6   : > { %s1009_s27 = sadd.s32 1, %s935_s24   ;;  %s29_s28 = sadd.s32 1, %s931_s23 }
   0x7   : > { %s26_s29 = ssub.s32 %s935_s24, %s1009_s27  ;;  %p36_p0 = scmp.ne.s32.totalorder %s931_s23, %s927_s22 }
   0x8   : > { %p27_p1 = scmp.eq.s32.totalorder %s26_s29, 0  ;;  %p37_p2 = scmp.eq.s32.totalorder %s935_s24, 0 }
   0x9   : > { %p42_p3 = scmp.ne.s32.totalorder %s927_s22, %s923_s21  ;;  %p43_p4 = scmp.eq.s32.totalorder %s1005_s25, 0 }
   0xa   : > { %s1021_s30 = scalar_select %p27_p1, %s931_s23, %s29_s28  }
   0xb   : > { %p1023_p5 = por %p37_p2, %p36_p0  ;;  %p1027_p6 = por %p43_p4, %p42_p3 }
   0xc   : > { %p171_p7 = scmp.eq.s32.totalorder %s1005_s25, 1  ;;  %p177_p8 = scmp.eq.s32.totalorder %s732_s26, 1 }
   0xd   : > { %p794_p10 = scmp.lt.s32.totalorder %s935_s24, 2  ;;  %s212_s11 = sand.u32 1, %s931_s23  }
   0xe   : > { %p1034_p11 = por %p171_p7, %p36_p0  ;;  %p1038_p12 = por %p177_p8, %p42_p3 }
   0xf   : > { %s748_s12 = sshll.u32 %s935_s24, 8  ;;  %s735_s13 = sshll.u32 %s212_s11, 4 }
  0x10   : > { %s1415_s9 = scalar_select %p1034_p11, 1, 0 }
  0x11   : > { %s1416_s10 = scalar_select %p1038_p12, 1, 0 }
  0x12   : > { %s1047_s16 = scalar_lea.hbm %s1404_s0, %s748_s12  ;;  %s216_s17 = scalar_lea.vmem [#allocation2], %s735_s13 }
  0x13   : > { %s224_s18 = sshll.u32 %s216_s17, 4  ;;  %p1051_p13 = pnand %p794_p10, %p1023_p5  ;;  %s1055_s18 = int_to_ptr.vmem [resolvable:$true] %s224_s18 }
  0x14   : > { %s213_s20 = scalar_lea.sflag [#allocation3], %s212_s11  ;;  %s839_s26 = scalar_lea.hbm %s1047_s16, 256 }
  0x15   : > { %p840_p2 = scmp.ne.s32.totalorder %s1047_s16, %s839_s26  ;;  %p841_p3 = pneg %p1051_p13 }
  0x16   : > { %s844_s7 = scalar_lea.hbm %s1404_s0, 512  ;;  %p845_p5 = scmp.lt.u32.totalorder %s1047_s16, %s1404_s0 }
  0x17   : > { %p842_p4 = pnand %p841_p3, %p840_p2  ;;  %p846_p8 = scmp.lt.u32.totalorder %s844_s7, %s839_s26 }
  0x18   : > { %p848_p9 = scmp.lt.u32.totalorder %s839_s26, %s1047_s16 }
  0x19   : > { %p843_p7 = pneg %p842_p4  ;;  %p847_p10 = por %p846_p8, %p845_p5 }
  0x1b   : > { %p849_p0 = por %p848_p9, %p847_p10 }
  0x1d   : > { %p850_p1 = pnand %p849_p0, %p843_p7 }
  0x1f   : > { %853 = shalt.err (!%p850_p1)
}
  0x20   : > { %s854_s11 = scalar_lea.vmem %s1055_s18, 256  ;;  %s937_s14 = smov [#allocation2]  }
  0x21   : > { %p855_p2 = scmp.ne.s32.totalorder %s1055_s18, %s854_s11  ;;  %s859_s15 = sshll.u32 %s937_s14, 4  ;;  %s860_s15 = int_to_ptr.vmem [resolvable:$false] %s859_s15 }
  0x22   : > { %s861_s17 = scalar_lea.vmem %s860_s15, 512  ;;  %p862_p11 = scmp.lt.s32.totalorder %s1055_s18, %s860_s15 }
  0x23   : > { %p857_p4 = pnand %p855_p2, %p841_p3  ;;  %p863_p5 = scmp.lt.s32.totalorder %s861_s17, %s854_s11 }
  0x25   : > { %p858_p12 = pneg %p857_p4  ;;  %p864_p8 = por %p863_p5, %p862_p11 }
  0x27   : > { %p865_p9 = pnand %p864_p8, %p858_p12 }
  0x29   : > { %868 = shalt.err (!%p865_p9)
}
  0x2a   : > { %789 = dma.hbm_to_vmem [thread:$0]  (!%p1051_p13), %s1047_s16, 256, %s1055_s18, %s213_s20  }
  0x2b   : > { %p1418_p0 = scmp.lt.s32.totalorder %s935_s24, 3  ;;  %p1419_p1 = scmp.ge.s32.totalorder %s935_s24, 1 }
  0x2d   : > { %p230_p3 = pnand %p1419_p1, %p1418_p0 }
  0x2e   : > { %s1089_s26 = sand.u32 (!%p230_p3), 1, %s927_s22  }
  0x2f   : > { %233 = sbr.rel (%p230_p3) target bundleno = 809 (0x329), region = 44  ;;  %s1412_s28 = sshll.u32 (!%p230_p3), %s1089_s26, 4 }
  0x30   : > { %s236_s29 = scalar_lea.sflag (!%p230_p3), [#allocation3], %s1089_s26  ;;  %s239_s19 = scalar_lea.vmem (!%p230_p3), [#allocation2], %s1412_s28 }
  0x36   : > { %914 = dma.done.wait (%p1027_p6), %s236_s29, 256  }
  0x37   : > { %916 = vsyncadd (%p1027_p6), %s236_s29, 4294967040  ;;  %v1099_v0 = vld [vmem:[%s239_s19] sm:$0xff]  ;;  %s938_s16 = smov 16   ;;  %s939_s18 = smov 17   ;;  %v1105_v1 = vld [vmem:[%s239_s19 + $0x8] sm:$0xff]  ;;  %v944_v2 = vmov 0.0   ;;  %v282_v5 = vlaneseq }
  0x38   : > { %297 = vrot.lane.b32.xlu1 %v1099_v0, %s938_s16  ;;  %278 = vrot.lane.b32.xlu0 %v1099_v0, %s939_s18  ;;  %s940_s8 = smov 15   ;;  %s941_s20 = smov 1   ;;  %v945_v3 = vmov 0   ;;  %v276_v4 = vld [vmem:[%s1406_s2] sm:$0xff]  ;;  %v1152_v11 = vld [vmem:[%s1409_s5 + $0x8] sm:$0xff]  ;;  %vm421_vm8 = vcmask 588800  }
  0x39   : > { %s942_s7 = smov 127   ;;  %s943_s12 = smov 113   ;;  %489 = vmatprep.mubr.f32.mxu0 %v944_v2  ;;  %634 = vmatprep.mubr.f32.mxu1 %v944_v2  ;;  %v1138_v6 = vshrl.u32 %v282_v5, 7  ;;  %v1140_v7 = vand.u32 127, %v282_v5  ;;  %v1147_v10 = vld [vmem:[%s1409_s5] sm:$0xff] }
  0x3a   : > { %838 = vset.pattern.permute.xlu0 %v945_v3  ;;  %s946_s13 = smov 112   ;;  %s947_s11 = smov 111  }
  0x3b   : > { %v306_v8 = vsub.s32 1, %v1138_v6  ;;  %v289_v9 = vsub.s32 0, %v1138_v6  ;;  %vm301_vm0 = vcmp.lt.s32.totalorder %v1140_v7, 16  ;;  %vm284_vm1 = vcmp.lt.s32.totalorder %v1140_v7, 17  ;;  %p1421_p11 = scmp.ne.s32.totalorder %s1415_s9, 0  ;;  %s948_s28 = smov [#allocation5]  }
  0x3c   : > { %299 = vrot.lane.b32.xlu1 %v1105_v1, %s938_s16  ;;  %280 = vrot.lane.b32.xlu0 %v1105_v1, %s939_s18  ;;  %v323_v20 = vsub.s32 2, %v1138_v6  ;;  %v340_v21 = vsub.s32 3, %v1138_v6  ;;  %vm318_vm2 = vcmp.lt.s32.totalorder %v1140_v7, 15  ;;  %vm335_vm3 = vcmp.lt.s32.totalorder %v1140_v7, 1  ;;  %s873_s14 = sshll.u32 %s948_s28, 4  ;;  %s874_s14 = int_to_ptr.vmem [resolvable:$false] %s873_s14 }
  0x3d   : > { %v1157_v14 = vrot.slane %v1147_v10, %v306_v8  ;;  %v1160_v15 = vrot.slane %v1147_v10, %v289_v9  ;;  %v1163_v16 = vrot.slane %v1152_v11, %v289_v9  ;;  %v1166_v17 = vrot.slane %v1152_v11, %v306_v8 }
  0x3e   : > { %v357_v34 = vsub.s32 4, %v1138_v6  ;;  %v1186_v35 = vrot.slane %v1147_v10, %v323_v20  ;;  %v1189_v36 = vrot.slane %v1152_v11, %v323_v20  ;;  %v1192_v37 = vrot.slane %v1147_v10, %v340_v21 }
  0x3f   : > { %v1195_v38 = vrot.slane %v1152_v11, %v340_v21  ;;  %vm352_vm4 = vcmp.lt.s32.totalorder %v1140_v7, 127  ;;  %v374_v57 = vsub.s32 5, %v1138_v6  ;;  %v391_v60 = vsub.s32 6, %v1138_v6 }
  0x40   : > { %316 = vrot.lane.b32.xlu1 %v1105_v1, %s940_s8  ;;  %314 = vrot.lane.b32.xlu0 %v1099_v0, %s940_s8  ;;  %v1207_v45 = vrot.slane %v1147_v10, %v357_v34  ;;  %v1210_v46 = vrot.slane %v1152_v11, %v357_v34  ;;  %vm369_vm5 = vcmp.lt.s32.totalorder %v1140_v7, 113  ;;  %vm386_vm6 = vcmp.lt.s32.totalorder %v1140_v7, 112 }
  0x41   : > { %v1228_v3 = vrot.slane %v1147_v10, %v374_v57  ;;  %v1232_v5 = vrot.slane %v1152_v11, %v374_v57  ;;  %v1236_v8 = vrot.slane %v1147_v10, %v391_v60  ;;  %v1239_v9 = vrot.slane %v1152_v11, %v391_v60 }
  0x42   : > { %vm403_vm7 = vcmp.lt.s32.totalorder %v1140_v7, 111 }
  0x44   : > { %333 = vrot.lane.b32.xlu1 %v1105_v1, %s941_s20  ;;  %331 = vrot.lane.b32.xlu0 %v1099_v0, %s941_s20 }
  0x48   : > { %350 = vrot.lane.b32.xlu1 %v1105_v1, %s942_s7  ;;  %348 = vrot.lane.b32.xlu0 %v1099_v0, %s942_s7 }
  0x4c   : > { %367 = vrot.lane.b32.xlu1 %v1105_v1, %s943_s12  ;;  %365 = vrot.lane.b32.xlu0 %v1099_v0, %s943_s12 }
  0x50   : > { %384 = vrot.lane.b32.xlu1 %v1105_v1, %s946_s13  ;;  %382 = vrot.lane.b32.xlu0 %v1099_v0, %s946_s13 }
  0x54   : > { %401 = vrot.lane.b32.xlu1 %v1105_v1, %s947_s11  ;;  %399 = vrot.lane.b32.xlu0 %v1099_v0, %s947_s11 }
  0x58   : > { %418 = vperm.xlu0 %838, %v276_v4   ;;  %v408_v4 = vsub.s32 7, %v1138_v6 }
  0x5a   : > { %v1251_v21 = vrot.slane %v1152_v11, %v408_v4 }
  0xaa   : > { %v298_v12 = vpop.permute.xlu1 %297  ;;  %v279_v13 = vpop.permute.xlu0 %278 }
  0xae   : > { %v300_v18 = vpop.permute.xlu1 %299  ;;  %v281_v19 = vpop.permute.xlu0 %280 }
  0xaf   : > { %v302_v22 = vsel %vm301_vm0, %v298_v12, %v300_v18  ;;  %v303_v23 = vsel %vm301_vm0, %v300_v18, %v298_v12  ;;  %v285_v24 = vsel %vm284_vm1, %v279_v13, %v281_v19  ;;  %v286_v25 = vsel %vm284_vm1, %v281_v19, %v279_v13 }
  0xb0   : > { %v312_v26 = vmul.f32 %v1157_v14, %v303_v23  ;;  %v295_v27 = vmul.f32 %v1160_v15, %v286_v25  ;;  %v296_v28 = vmul.f32 %v1163_v16, %v285_v24  ;;  %v313_v29 = vmul.f32 %v1166_v17, %v302_v22 }
  0xb2   : > { %v317_v30 = vpop.permute.xlu1 %316  ;;  %v315_v31 = vpop.permute.xlu0 %314  ;;  %v750_v32 = vpack.c.bf16 %v313_v29, %v296_v28  ;;  %v752_v33 = vpack.c.bf16 %v312_v26, %v295_v27  ;;  %v1258_v26 = vrot.slane %v1147_v10, %v408_v4  ;;  %v274_v10 = vld [vmem:[%s1405_s1] sm:$0xff] }
  0xb3   : > { %v319_v39 = vsel %vm318_vm2, %v315_v31, %v317_v30  ;;  %v320_v40 = vsel %vm318_vm2, %v317_v30, %v315_v31 }
  0xb4   : > { %751 = vmatprep.subr.bf16.mxu0 %v750_v32  ;;  %v329_v47 = vmul.f32 %v1186_v35, %v320_v40  ;;  %v330_v48 = vmul.f32 %v1189_v36, %v319_v39 }
  0xb5   : > { %753 = vmatpush1.bf16.msra.mxu0 %v752_v33 }
  0xb6   : > { %v334_v41 = vpop.permute.xlu1 %333  ;;  %v332_v42 = vpop.permute.xlu0 %331 }
  0xb7   : > { %v336_v43 = vsel %vm335_vm3, %v332_v42, %v334_v41  ;;  %v337_v44 = vsel %vm335_vm3, %v334_v41, %v332_v42 }
  0xb8   : > { %v346_v49 = vmul.f32 %v1192_v37, %v337_v44  ;;  %v347_v50 = vmul.f32 %v1195_v38, %v336_v43 }
  0xba   : > { %v351_v51 = vpop.permute.xlu1 %350  ;;  %v349_v52 = vpop.permute.xlu0 %348  ;;  %v754_v53 = vpack.c.bf16 %v347_v50, %v330_v48  ;;  %v756_v54 = vpack.c.bf16 %v346_v49, %v329_v47  ;;  %v277_v47 = vld [vmem:[%s1408_s4] sm:$0xff] }
  0xbb   : > { %v353_v55 = vsel %vm352_vm4, %v349_v52, %v351_v51  ;;  %v354_v56 = vsel %vm352_vm4, %v351_v51, %v349_v52 }
  0xbc   : > { %v363_v58 = vmul.f32 %v1207_v45, %v353_v55  ;;  %v364_v59 = vmul.f32 %v1210_v46, %v354_v56  ;;  %755 = vmatprep.subr.bf16.mxu0 %v754_v53 }
  0xbd   : > { %757 = vmatpush1.bf16.msra.mxu0 %v756_v54 }
  0xbe   : > { %v368_v61 = vpop.permute.xlu1 %367  ;;  %v366_v62 = vpop.permute.xlu0 %365  ;;  %v758_v63 = vpack.c.bf16 %v364_v59, %v1105_v1  ;;  %v760_v2 = vpack.c.bf16 %v363_v58, %v1099_v0 }
  0xbf   : > { %v370_v12 = vsel %vm369_vm5, %v366_v62, %v368_v61  ;;  %v371_v13 = vsel %vm369_vm5, %v368_v61, %v366_v62 }
  0xc0   : > { %759 = vmatprep.subr.bf16.mxu0 %v758_v63  ;;  %v380_v22 = vmul.f32 %v1228_v3, %v370_v12  ;;  %v381_v23 = vmul.f32 %v1232_v5, %v371_v13 }
  0xc1   : > { %761 = vmatpush1.bf16.msra.mxu0 %v760_v2 }
  0xc2   : > { %v385_v6 = vpop.permute.xlu1 %384  ;;  %v383_v18 = vpop.permute.xlu0 %382 }
  0xc3   : > { %v387_v19 = vsel %vm386_vm6, %v383_v18, %v385_v6  ;;  %v388_v20 = vsel %vm386_vm6, %v385_v6, %v383_v18 }
  0xc4   : > { %v397_v24 = vmul.f32 %v1236_v8, %v387_v19  ;;  %v398_v25 = vmul.f32 %v1239_v9, %v388_v20 }
  0xc6   : > { %v402_v27 = vpop.permute.xlu1 %401  ;;  %v400_v28 = vpop.permute.xlu0 %399  ;;  %v762_v29 = vpack.c.bf16 %v398_v25, %v381_v23  ;;  %v764_v30 = vpack.c.bf16 %v397_v24, %v380_v22 }
  0xc7   : > { %v404_v31 = vsel %vm403_vm7, %v400_v28, %v402_v27  ;;  %v405_v11 = vsel %vm403_vm7, %v402_v27, %v400_v28 }
  0xc8   : > { %v415_v32 = vmul.f32 %v1251_v21, %v405_v11  ;;  %763 = vmatprep.subr.bf16.mxu0 %v762_v29  ;;  %v414_v33 = vmul.f32 %v1258_v26, %v404_v31 }
  0xc9   : > { %765 = vmatpush1.bf16.msra.mxu0 %v764_v30 }
  0xca   : > { %441 = vmatprep.subr.mxu0 %v415_v32 }
  0xcd   : > { %442 = vmatpush1.msra.mxu0 %v414_v33 }
  0xce   : > { %741 = vmatmul.mubr.msk.f32.vlgmr.msra.gmra.mrb[0].mxu0 %vm421_vm8, %v274_v10 }
  0xd7   : > { %v419_v34 = vpop.permute.xlu0 %418 }
 0x1a1   : > { %v491_v39 = vpop.f32.mrb[0].mxu0 }
 0x1a2   : > { %v492_v40 = vadd.f32 %v491_v39, %v419_v34  ;;  %v493_v41 = vpop.f32.mrb[1].mxu0 }
 0x1a3   : > { %v494_v43 = vadd.f32 %v493_v41, %v419_v34 }
 0x1a4   : > { %v1270_v42 = vmax.f32 %v492_v40, 0.0 }
 0x1a5   : > { %v497_v44 = vmax.f32 %v494_v43, 0.0 }
 0x1a6   : > { %506 = vrot.lane.b32.xlu0 %v1270_v42, %s938_s16  ;;  %498 = vrot.lane.b32.xlu1 %v1270_v42, %s939_s18 }
 0x1aa   : > { %514 = vrot.lane.b32.xlu0 %v1270_v42, %s940_s8  ;;  %500 = vrot.lane.b32.xlu1 %v497_v44, %s939_s18 }
 0x1ae   : > { %522 = vrot.lane.b32.xlu0 %v1270_v42, %s941_s20  ;;  %508 = vrot.lane.b32.xlu1 %v497_v44, %s938_s16  ;;  %s875_s16 = scalar_lea.vmem %s874_s14, 512 }
 0x1b2   : > { %530 = vrot.lane.b32.xlu0 %v1270_v42, %s942_s7  ;;  %516 = vrot.lane.b32.xlu1 %v497_v44, %s940_s8 }
 0x1b6   : > { %538 = vrot.lane.b32.xlu0 %v1270_v42, %s943_s12  ;;  %524 = vrot.lane.b32.xlu1 %v497_v44, %s941_s20 }
 0x1ba   : > { %546 = vrot.lane.b32.xlu0 %v1270_v42, %s946_s13  ;;  %532 = vrot.lane.b32.xlu1 %v497_v44, %s942_s7  ;;  %s749_s7 = sshll.u32 %s1005_s25, 8  ;;  %s648_s25 = scalar_lea.sflag [#allocation4], %s1089_s26 }
 0x1bb   : > { %s1360_s29 = scalar_lea.hbm %s1410_s6, %s749_s7 }
 0x1be   : > { %554 = vrot.lane.b32.xlu0 %v1270_v42, %s947_s11  ;;  %540 = vrot.lane.b32.xlu1 %v497_v44, %s943_s12  ;;  %s1420_s12 = sshll.u32 %s1089_s26, 4 }
 0x1c2   : > { %564 = vperm.xlu0 %838, %v277_v47   ;;  %548 = vrot.lane.b32.xlu1 %v497_v44, %s946_s13  ;;  %s267_s13 = scalar_lea.vmem [#allocation5], %s1420_s12 }
 0x1c6   : > { %556 = vrot.lane.b32.xlu1 %v497_v44, %s947_s11  ;;  %s662_s11 = sshll.u32 %s267_s13, 4  ;;  %s1362_s11 = int_to_ptr.vmem [resolvable:$true] %s662_s11 }
 0x1c7   : > { %s869_s19 = scalar_lea.vmem %s1362_s11, 256  ;;  %p876_p7 = scmp.lt.s32.totalorder %s1362_s11, %s874_s14 }
 0x1c8   : > { %p870_p6 = scmp.ne.s32.totalorder %s1362_s11, %s869_s19  ;;  %p877_p10 = scmp.lt.s32.totalorder %s875_s16, %s869_s19 }
 0x1ca   : > { %p871_p12 = pnand %p870_p6, %p1421_p11  ;;  %p878_p2 = por %p877_p10, %p876_p7 }
 0x1cc   : > { %p872_p13 = pneg %p871_p12 }
 0x1ce   : > { %p879_p4 = pnand %p878_p2, %p872_p13 }
 0x218   : > { %v507_v48 = vpop.permute.xlu0 %506  ;;  %v499_v49 = vpop.permute.xlu1 %498 }
 0x21c   : > { %v515_v50 = vpop.permute.xlu0 %514  ;;  %v501_v51 = vpop.permute.xlu1 %500 }
 0x21d   : > { %v502_v52 = vsel %vm284_vm1, %v499_v49, %v501_v51  ;;  %v503_v53 = vsel %vm284_vm1, %v501_v51, %v499_v49 }
 0x21e   : > { %v504_v58 = vmul.f32 %v503_v53, %v1160_v15  ;;  %v505_v60 = vmul.f32 %v502_v52, %v1163_v16 }
 0x220   : > { %v523_v54 = vpop.permute.xlu0 %522  ;;  %v509_v55 = vpop.permute.xlu1 %508 }
 0x221   : > { %v510_v56 = vsel %vm301_vm0, %v507_v48, %v509_v55  ;;  %v511_v57 = vsel %vm301_vm0, %v509_v55, %v507_v48 }
 0x222   : > { %v512_v59 = vmul.f32 %v511_v57, %v1157_v14  ;;  %v513_v61 = vmul.f32 %v510_v56, %v1166_v17 }
 0x224   : > { %v517_v62 = vpop.permute.xlu1 %516  ;;  %v766_v63 = vpack.c.bf16 %v513_v61, %v505_v60  ;;  %v768_v2 = vpack.c.bf16 %v512_v59, %v504_v58  ;;  %v531_v4 = vpop.permute.xlu0 %530 }
 0x225   : > { %v518_v12 = vsel %vm318_vm2, %v515_v50, %v517_v62  ;;  %v519_v13 = vsel %vm318_vm2, %v517_v62, %v515_v50 }
 0x226   : > { %767 = vmatprep.subr.bf16.mxu1 %v766_v63  ;;  %v520_v16 = vmul.f32 %v519_v13, %v1186_v35  ;;  %v521_v17 = vmul.f32 %v518_v12, %v1189_v36 }
 0x227   : > { %769 = vmatpush1.bf16.msra.mxu1 %v768_v2 }
 0x228   : > { %v525_v6 = vpop.permute.xlu1 %524  ;;  %v539_v20 = vpop.permute.xlu0 %538 }
 0x229   : > { %v526_v14 = vsel %vm335_vm3, %v523_v54, %v525_v6  ;;  %v527_v15 = vsel %vm335_vm3, %v525_v6, %v523_v54 }
 0x22a   : > { %v528_v18 = vmul.f32 %v527_v15, %v1192_v37  ;;  %v529_v19 = vmul.f32 %v526_v14, %v1195_v38 }
 0x22c   : > { %v533_v22 = vpop.permute.xlu1 %532  ;;  %v770_v23 = vpack.c.bf16 %v529_v19, %v521_v17  ;;  %v772_v24 = vpack.c.bf16 %v528_v18, %v520_v16  ;;  %v547_v29 = vpop.permute.xlu0 %546 }
 0x22d   : > { %v534_v25 = vsel %vm352_vm4, %v531_v4, %v533_v22  ;;  %v535_v27 = vsel %vm352_vm4, %v533_v22, %v531_v4 }
 0x22e   : > { %v536_v28 = vmul.f32 %v534_v25, %v1207_v45  ;;  %v537_v35 = vmul.f32 %v535_v27, %v1210_v46  ;;  %771 = vmatprep.subr.bf16.mxu1 %v770_v23 }
 0x22f   : > { %773 = vmatpush1.bf16.msra.mxu1 %v772_v24 }
 0x230   : > { %v541_v36 = vpop.permute.xlu1 %540  ;;  %v774_v37 = vpack.c.bf16 %v537_v35, %v497_v44  ;;  %v776_v38 = vpack.c.bf16 %v536_v28, %v1270_v42  ;;  %v555_v39 = vpop.permute.xlu0 %554 }
 0x231   : > { %v542_v30 = vsel %vm369_vm5, %v539_v20, %v541_v36  ;;  %v543_v31 = vsel %vm369_vm5, %v541_v36, %v539_v20 }
 0x232   : > { %775 = vmatprep.subr.bf16.mxu1 %v774_v37  ;;  %v544_v32 = vmul.f32 %v542_v30, %v1228_v3  ;;  %v545_v33 = vmul.f32 %v543_v31, %v1232_v5 }
 0x233   : > { %777 = vmatpush1.bf16.msra.mxu1 %v776_v38 }
 0x234   : > { %v549_v11 = vpop.permute.xlu1 %548 }
 0x235   : > { %v550_v45 = vsel %vm386_vm6, %v547_v29, %v549_v11  ;;  %v551_v46 = vsel %vm386_vm6, %v549_v11, %v547_v29 }
 0x236   : > { %v552_v10 = vmul.f32 %v550_v45, %v1236_v8  ;;  %v553_v34 = vmul.f32 %v551_v46, %v1239_v9  ;;  %v275_v8 = vld [vmem:[%s1407_s3] sm:$0xff] }
 0x238   : > { %v557_v40 = vpop.permute.xlu1 %556  ;;  %v778_v41 = vpack.c.bf16 %v553_v34, %v545_v33  ;;  %v780_v42 = vpack.c.bf16 %v552_v10, %v544_v32 }
 0x239   : > { %v559_v43 = vsel %vm403_vm7, %v557_v40, %v555_v39  ;;  %v558_v44 = vsel %vm403_vm7, %v555_v39, %v557_v40 }
 0x23a   : > { %v561_v3 = vmul.f32 %v559_v43, %v1251_v21  ;;  %779 = vmatprep.subr.bf16.mxu1 %v778_v41  ;;  %v560_v5 = vmul.f32 %v558_v44, %v1258_v26 }
 0x23b   : > { %781 = vmatpush1.bf16.msra.mxu1 %v780_v42 }
 0x23c   : > { %586 = vmatprep.subr.mxu1 %v561_v3 }
 0x23f   : > { %587 = vmatpush1.msra.mxu1 %v560_v5 }
 0x240   : > { %742 = vmatmul.mubr.msk.f32.vlgmr.msra.gmra.mrb[0].mxu1 %vm421_vm8, %v275_v8 }
 0x241   : > { %v565_v9 = vpop.permute.xlu0 %564 }
 0x313   : > { %v636_v7 = vpop.f32.mrb[0].mxu1 }
 0x314   : > { %v637_v47 = vadd.f32 %v636_v7, %v565_v9  ;;  %v638_v48 = vpop.f32.mrb[1].mxu1 }
 0x315   : > { %v639_v49 = vadd.f32 %v638_v48, %v565_v9 }
 0x316   : > { %v641_v21 = vadd.f32 %v637_v47, %v1099_v0 }
 0x317   : > { %v642_v26 = vadd.f32 %v639_v49, %v1105_v1 }
 0x318   : > { %v643_v50 = vmax.f32 %v641_v21, 0.0 }
 0x319   : > { %v644_v51 = vmax.f32 %v642_v26, 0.0 }
 0x31a   : > { %645 = vst [vmem:[%s267_s13] sm:$0xff] %v643_v50 }
 0x31b   : > { %646 = vst [vmem:[%s267_s13 + $0x8] sm:$0xff] %v644_v51 }
 0x31c   : > { %882 = shalt.err (!%p879_p4)
}
 0x31d   : > { %s883_s26 = scalar_lea.hbm %s1360_s29, 256  ;;  %s887_s20 = scalar_lea.hbm %s1410_s6, 512 }
 0x31e   : > { %p884_p5 = scmp.ne.s32.totalorder %s1360_s29, %s883_s26  ;;  %p888_p0 = scmp.lt.u32.totalorder %s1360_s29, %s1410_s6 }
 0x31f   : > { %p889_p1 = scmp.lt.u32.totalorder %s887_s20, %s883_s26  ;;  %p891_p6 = scmp.lt.u32.totalorder %s883_s26, %s1360_s29 }
 0x320   : > { %p885_p8 = pnand %p884_p5, %p1421_p11 }
 0x321   : > { %p890_p3 = por %p889_p1, %p888_p0 }
 0x322   : > { %p886_p9 = pneg %p885_p8 }
 0x323   : > { %p892_p12 = por %p891_p6, %p890_p3 }
 0x325   : > { %p893_p13 = pnand %p892_p12, %p886_p9 }
 0x327   : > { %896 = shalt.err (!%p893_p13)
}
 0x328   : > { %784 = dma.vmem_to_hbm [thread:$0]  (%p1421_p11), %s1362_s11, 256, %s1360_s29, %s648_s25  }
 0x329 PF: > { %s674_s13 = sand.u32 1, %s923_s21   ;;  %p1422_p7 = scmp.ne.s32.totalorder %s1416_s10, 0 }
 0x32a   : > { %p1423_p10 = scmp.ge.s32.totalorder %s935_s24, 2  ;;  %s675_s15 = scalar_lea.sflag [#allocation4], %s674_s13 }
 0x32c   : > { %p791_p2 = pnand %p1423_p10, %p1422_p7 }
 0x32e   : > { %918 = dma.done.wait (!%p791_p2), %s675_s15, 256  }
 0x32f   : > { %920 = vsyncadd (!%p791_p2), %s675_s15, 4294967040  ;;  %p19_p4 = scmp.ge.s32.totalorder %s1009_s27, 4   ;;  %s1424_s21 = smov %s927_s22 }
 0x330   : > { %s1425_s22 = smov %s931_s23  ;;  %s1426_s23 = smov %s1021_s30 }
 0x331   : > { %s1427_s24 = smov %s1009_s27  ;;  %21 = sbr.rel (!%p19_p4) target bundleno = 5 (0x5), region = 89 }
 0x338   :  { %680 = vsyncpa [#allocation3], 1 }
 0x339   :  { %682 = vsyncpa [#allocation3 + $0x1], 1 }
 0x33a   :  { %683 = vsyncpa [#allocation4], 1 }
 0x33b   :  { %685 = vsyncpa [#allocation4 + $0x1], 1 }

</bundles_post_ra>
